<compile_context>
chip_gen: v5e
topology: v5e:2x2
jax: 0.10.0
libtpu: 0.0.40
codegen_flags: <defaults>
</compile_context>

<pallas_src>
import jax
import jax.numpy as jnp
from jax.experimental import pallas as pl
from jax.experimental.pallas import tpu as pltpu


def _round_up(x, m):
    return (x + m - 1) // m * m


def _matmul_kernel(adj_ref, feat_ref, out_ref, acc_ref):
    """out[i,j] = sum_k adj[i,k] @ feat[k,j], f32 accumulation in VMEM scratch."""
    @pl.when(pl.program_id(2) == 0)
    def _():
        acc_ref[...] = jnp.zeros_like(acc_ref)

    acc_ref[...] += jnp.dot(
        adj_ref[...], feat_ref[...], preferred_element_type=jnp.float32
    )

    @pl.when(pl.program_id(2) == pl.num_programs(2) - 1)
    def _():
        out_ref[...] = acc_ref[...].astype(out_ref.dtype)


def lightgcn_aggregate(adj, feat, out_dtype=jnp.float32):
    """Tiled, K-accumulating Pallas matmul: H_dst = adj @ feat (the hot path)."""
    M, K = adj.shape
    K2, N = feat.shape
    assert K == K2

    # Tile sizes: 128/256-aligned (MXU-friendly on all generations), capped so that
    # double-buffered bf16 inputs + f32 accumulator stay well under v7x's VMEM.
    TM = min(256, _round_up(M, 128))
    TN = min(256, _round_up(N, 128))
    TK = min(512, _round_up(K, 128))
    M_pad = _round_up(M, TM)
    N_pad = _round_up(N, TN)
    K_pad = _round_up(K, TK)

    # bf16 inputs (halves HBM traffic, full-rate MXU), f32 accumulation.
    adj_p = jnp.pad(adj, ((0, M_pad - M), (0, K_pad - K))).astype(jnp.bfloat16)
    feat_p = jnp.pad(feat, ((0, K_pad - K), (0, N_pad - N))).astype(jnp.bfloat16)

    grid = (M_pad // TM, N_pad // TN, K_pad // TK)

    cost = pl.CostEstimate(
        flops=2 * M_pad * K_pad * N_pad,
        transcendentals=0,
        bytes_accessed=adj_p.size * 2 + feat_p.size * 2 + M_pad * N_pad * 4,
    )

    out = pl.pallas_call(
        _matmul_kernel,
        out_shape=jax.ShapeDtypeStruct((M_pad, N_pad), out_dtype),
        grid_spec=pltpu.PrefetchScalarGridSpec(
            num_scalar_prefetch=0,
            grid=grid,
            in_specs=[
                pl.BlockSpec((TM, TK), lambda i, j, k: (i, k)),
                pl.BlockSpec((TK, TN), lambda i, j, k: (k, j)),
            ],
            out_specs=pl.BlockSpec((TM, TN), lambda i, j, k: (i, j)),
            scratch_shapes=[pltpu.VMEM((TM, TN), jnp.float32)],
        ),
        compiler_params=pltpu.CompilerParams(
            dimension_semantics=("parallel", "parallel", "arbitrary"),
            vmem_limit_bytes=32 * 1024 * 1024,
        ),
        cost_estimate=cost,
    )(adj_p, feat_p)

    return out[:M, :N]


def build_norm_adj(src_idx, dst_idx, norm, n_src, n_dst, dtype=jnp.float32):
    """Glue: A[dst, src] += norm (duplicate edges accumulate, like copy_e + sum)."""
    adj = jnp.zeros((n_dst, n_src), dtype=dtype)
    adj = adj.at[dst_idx, src_idx].add(norm.reshape(-1).astype(dtype))
    return adj


def lightgcn_layer(edges, norm_dict, feat_dict, num_nodes):
    """JAX/Pallas equivalent of LightGCNLayer.forward.

    edges: {(srctype, etype, dsttype): (src_idx, dst_idx)}
    norm_dict: {(srctype, etype, dsttype): norm of shape (E, 1)}
    feat_dict: {ntype: [num_nodes[ntype], D] float32}
    """
    # Group canonical edge types by destination type so the cross-edge-type 'sum'
    # is fused into a single K-accumulating kernel per dst type (no extra HBM passes).
    by_dst = {}
    for key, (src, dst) in edges.items():
        _, _, dsttype = key
        by_dst.setdefault(dsttype, []).append((key, src, dst))

    out = {}
    for dsttype, etlist in by_dst.items():
        n_dst = num_nodes[dsttype]
        adj_blocks, feat_blocks = [], []
        for (srctype, etype, _), src, dst in etlist:
            norm = norm_dict[(srctype, etype, dsttype)]
            adj_blocks.append(
                build_norm_adj(src, dst, norm, num_nodes[srctype], n_dst)
            )
            feat_blocks.append(feat_dict[srctype])
        adj = jnp.concatenate(adj_blocks, axis=1)    # [n_dst, sum(n_src)]
        feat = jnp.concatenate(feat_blocks, axis=0)  # [sum(n_src), D]
        out[dsttype] = lightgcn_aggregate(adj, feat)
    return out


if __name__ == "__main__":
    key = jax.random.PRNGKey(0)
    n_user, n_item, d, n_edges = 48, 64, 32, 200
    k_src, k_dst, k_u, k_i = jax.random.split(key, 4)

    # deterministic bipartite user<->item graph
    src_u = jax.random.randint(k_src, (n_edges,), 0, n_user)
    dst_i = jax.random.randint(k_dst, (n_edges,), 0, n_item)

    feat_dict = {
        "user": jax.random.normal(k_u, (n_user, d), jnp.float32),
        "item": jax.random.normal(k_i, (n_item, d), jnp.float32),
    }

    # LightGCN symmetric normalization per edge: 1/sqrt(deg(src)*deg(dst))
    deg_u = jnp.zeros((n_user,), jnp.float32).at[src_u].add(1.0)
    deg_i = jnp.zeros((n_item,), jnp.float32).at[dst_i].add(1.0)
    norm = 1.0 / jnp.sqrt(
        jnp.maximum(deg_u[src_u], 1.0) * jnp.maximum(deg_i[dst_i], 1.0)
    )
    norm_dict = {
        ("user", "ui", "item"): norm[:, None],
        ("item", "iu", "user"): norm[:, None],
    }
    edges = {
        ("user", "ui", "item"): (src_u, dst_i),
        ("item", "iu", "user"): (dst_i, src_u),
    }
    num_nodes = {"user": n_user, "item": n_item}

    out = lightgcn_layer(edges, norm_dict, feat_dict, num_nodes)
    out = {k: jax.block_until_ready(v) for k, v in out.items()}

    # pure-JAX f32 reference (per-edge message + segment sum), same semantics as DGL path
    ref_item = jax.ops.segment_sum(
        norm[:, None] * feat_dict["user"][src_u], dst_i, n_item
    )
    ref_user = jax.ops.segment_sum(
        norm[:, None] * feat_dict["item"][dst_i], src_u, n_user
    )
    assert out["item"].shape == (n_item, d) and out["user"].shape == (n_user, d)
    # bf16 inputs with f32 accumulation -> small relative perturbation vs f32 reference
    assert jnp.allclose(out["item"], ref_item, atol=3e-2, rtol=3e-2)
    assert jnp.allclose(out["user"], ref_user, atol=3e-2, rtol=3e-2)

    print("KERNEL_OK")
</pallas_src>

<mosaic_0001>
module attributes {stable_mosaic.version = 11 : i64} {
  func.func @_matmul_kernel(%arg0: i32, %arg1: i32, %arg2: i32, %arg3: memref<128x128xbf16, #tpu.memory_space<vmem>>, %arg4: memref<128x128xbf16, #tpu.memory_space<vmem>>, %arg5: memref<128x128xf32, #tpu.memory_space<vmem>>, %arg6: memref<128x128xf32, #tpu.memory_space<vmem>>) attributes {dimension_semantics = [#tpu.dimension_semantics<parallel>, #tpu.dimension_semantics<parallel>, #tpu.dimension_semantics<arbitrary>], iteration_bounds = array<i64: 1, 1, 1>, scalar_prefetch = 0 : i64, scratch_operands = 1 : i64, tpu.core_type = #tpu.core_type<tc>, window_params = [{transform_indices = @transform_0, window_bounds = array<i64: 128, 128>}, {transform_indices = @transform_1, window_bounds = array<i64: 128, 128>}, {transform_indices = @transform_2, window_bounds = array<i64: 128, 128>}]} {
    %c0_i32 = arith.constant 0 : i32
    %0 = arith.cmpi eq, %arg2, %c0_i32 : i32
    %1 = arith.extui %0 : i1 to i32
    %c0_i32_0 = arith.constant 0 : i32
    %2 = arith.cmpi ne, %1, %c0_i32_0 : i32
    scf.if %2 {
      %cst_10 = arith.constant 0.000000e+00 : f32
      %12 = vector.broadcast %cst_10 : f32 to vector<128x128xf32>
      %c0_11 = arith.constant 0 : index
      %c0_12 = arith.constant 0 : index
      %13 = vector.load %arg6[%c0_11, %c0_12] : memref<128x128xf32, #tpu.memory_space<vmem>>, vector<128x128xf32>
      tpu.vector_store %arg6[%c0_11, %c0_12], %12 {strides = array<i32>} : memref<128x128xf32, #tpu.memory_space<vmem>>, vector<128x128xf32>,
    } else {
    }
    %c0 = arith.constant 0 : index
    %c0_1 = arith.constant 0 : index
    %3 = vector.load %arg6[%c0, %c0_1] : memref<128x128xf32, #tpu.memory_space<vmem>>, vector<128x128xf32>
    %c0_2 = arith.constant 0 : index
    %c0_3 = arith.constant 0 : index
    %4 = vector.load %arg3[%c0_2, %c0_3] : memref<128x128xbf16, #tpu.memory_space<vmem>>, vector<128x128xbf16>
    %c0_4 = arith.constant 0 : index
    %c0_5 = arith.constant 0 : index
    %5 = vector.load %arg4[%c0_4, %c0_5] : memref<128x128xbf16, #tpu.memory_space<vmem>>, vector<128x128xbf16>
    %cst = arith.constant dense<0.000000e+00> : vector<128x128xf32>
    %6 = tpu.matmul %4, %5, %cst {dimension_numbers = #tpu.dot_dimension_numbers<[1], [0], [0], [1], [0, 0, 1, 1], [], []>} : vector<128x128xbf16>, vector<128x128xbf16>, vector<128x128xf32> -> vector<128x128xf32>
    %7 = arith.addf %3, %6 : vector<128x128xf32>
    %c0_6 = arith.constant 0 : index
    %c0_7 = arith.constant 0 : index
    %8 = vector.load %arg6[%c0_6, %c0_7] : memref<128x128xf32, #tpu.memory_space<vmem>>, vector<128x128xf32>
    tpu.vector_store %arg6[%c0_6, %c0_7], %7 {strides = array<i32>} : memref<128x128xf32, #tpu.memory_space<vmem>>, vector<128x128xf32>,
    %c0_i32_8 = arith.constant 0 : i32
    %9 = arith.cmpi eq, %arg2, %c0_i32_8 : i32
    %10 = arith.extui %9 : i1 to i32
    %c0_i32_9 = arith.constant 0 : i32
    %11 = arith.cmpi ne, %10, %c0_i32_9 : i32
    scf.if %11 {
      %c0_10 = arith.constant 0 : index
      %c0_11 = arith.constant 0 : index
      %12 = vector.load %arg6[%c0_10, %c0_11] : memref<128x128xf32, #tpu.memory_space<vmem>>, vector<128x128xf32>
      %c0_12 = arith.constant 0 : index
      %c0_13 = arith.constant 0 : index
      %13 = vector.load %arg5[%c0_12, %c0_13] : memref<128x128xf32, #tpu.memory_space<vmem>>, vector<128x128xf32>
      tpu.vector_store %arg5[%c0_12, %c0_13], %12 {strides = array<i32>} : memref<128x128xf32, #tpu.memory_space<vmem>>, vector<128x128xf32>,
    } else {
    }
    return
  }
  func.func @transform_0(%arg0: i32, %arg1: i32, %arg2: i32) -> (i32, i32) {
    %c0_i32 = arith.constant 0 : i32
    return %arg0, %arg2 : i32, i32
  }
  func.func @transform_1(%arg0: i32, %arg1: i32, %arg2: i32) -> (i32, i32) {
    %c0_i32 = arith.constant 0 : i32
    return %arg2, %arg1 : i32, i32
  }
  func.func @transform_2(%arg0: i32, %arg1: i32, %arg2: i32) -> (i32, i32) {
    %c0_i32 = arith.constant 0 : i32
    return %arg0, %arg1 : i32, i32
  }
}

</mosaic_0001>

<bundles_post_ra>
// kernel: tpu_custom_call.1
= control target key start
LH: loop header
LB: loop body
LE: loop exit
PB: predicated region body
PF: predicated region fallthrough
CT: control target
= control target key end

     0   :  { %7 = vsyncpa [#allocation4], 0  ;;  %s564_s0 = inlined_call_operand.hbm [shape: bf16[128,128], index: 0, kind: input, shape index: {}]   ;;  %s565_s1 = inlined_call_operand.hbm [shape: bf16[128,128], index: 1, kind: input, shape index: {}]   ;;  %s566_s2 = inlined_call_operand.hbm [shape: f32[128,128], index: 2, kind: output, shape index: {}]  }
   0x1   :  { %8 = vsyncpa [#allocation7], 0 }
   0x2   :  { %9 = vsyncpa [#allocation5], 0  ;;  %s14_s11 = sshll.u32 %s564_s0, 4  ;;  %s533_s12 = smov [#allocation3]   ;;  %s15_s11 = int_to_ptr.hbm [resolvable:$true] %s14_s11 }
   0x3   :  { %s16_s13 = sshll.u32 %s533_s12, 4  ;;  %s27_s16 = sshll.u32 %s565_s1, 4  ;;  %s17_s13 = int_to_ptr.vmem [resolvable:$true] %s16_s13  ;;  %s28_s16 = int_to_ptr.hbm [resolvable:$true] %s27_s16 }
   0x4   :  { %s534_s17 = smov 64   ;;  %s535_s18 = smov 4  }
   0x5   :  { %22 = dma.hbm_to_vmem [thread:$0]  %s15_s11, 1024, %s17_s13, [#allocation4], %s534_s17, %s534_s17, %s535_s18  }
   0x6   :  { %s536_s19 = smov [#allocation6]  }
   0x7   :  { %s29_s20 = sshll.u32 %s536_s19, 4  ;;  %s30_s20 = int_to_ptr.vmem [resolvable:$true] %s29_s20 }
   0x8   :  { %35 = dma.hbm_to_vmem [thread:$0]  %s28_s16, 1024, %s30_s20, [#allocation7], %s534_s17, %s534_s17, %s535_s18  }
   0x9   :  { %527 = dma.done.wait [#allocation4], 1024  }
   0xa   :  { %528 = vsyncadd [#allocation4], 4294966272 }
   0xb   :  { %529 = dma.done.wait [#allocation7], 1024  }
   0xc   :  { %530 = vsyncadd [#allocation7], 4294966272  ;;  %v423_v0 = vld [vmem:[#allocation6 + $0x38] sm:$0xff]  ;;  %v422_v1 = vld [vmem:[#allocation6 + $0x30] sm:$0xff]  ;;  %s537_s0 = smov [#allocation8]   ;;  %s330_s23 = sshll.u32 %s566_s2, 4  ;;  %s331_s23 = int_to_ptr.hbm [resolvable:$true] %s330_s23 }
   0xd   :  { %208 = vmatpush.bf16.msra.mxu0 %v423_v0  ;;  %424 = vmatpush.bf16.msra.mxu1 %v423_v0  ;;  %v421_v2 = vld [vmem:[#allocation6 + $0x28] sm:$0xff]  ;;  %v420_v3 = vld [vmem:[#allocation6 + $0x20] sm:$0xff]  ;;  %v419_v4 = vld [vmem:[#allocation6 + $0x18] sm:$0xff]  ;;  %s328_s1 = sshll.u32 %s537_s0, 4  ;;  %s538_s24 = smov 128   ;;  %s329_s1 = int_to_ptr.vmem [resolvable:$true] %s328_s1 }
   0xe   :  { %425 = vmatpush.bf16.msra.mxu2 %v423_v0  ;;  %426 = vmatpush.bf16.msra.mxu3 %v423_v0  ;;  %v418_v5 = vld [vmem:[#allocation6 + $0x10] sm:$0xff]  ;;  %v417_v6 = vld [vmem:[#allocation6 + $0x8] sm:$0xff]  ;;  %v416_v7 = vld [vmem:[#allocation6] sm:$0xff]  ;;  %s539_s25 = smov 8  }
   0xf   :  { %v408_v8 = vld [vmem:[#allocation3] sm:$0xff]  ;;  %v410_v9 = vld [vmem:[#allocation3 + $0x10] sm:$0xff]  ;;  %v409_v12 = vld [vmem:[#allocation3 + $0x8] sm:$0xff] }
  0x10   :  { %v412_v10 = vld [vmem:[#allocation3 + $0x20] sm:$0xff]  ;;  %v414_v11 = vld [vmem:[#allocation3 + $0x30] sm:$0xff]  ;;  %v411_v13 = vld [vmem:[#allocation3 + $0x18] sm:$0xff] }
  0x11   :  { %209 = vmatpush.bf16.msra.mxu0 %v422_v1  ;;  %427 = vmatpush.bf16.msra.mxu1 %v422_v1  ;;  %v413_v14 = vld [vmem:[#allocation3 + $0x28] sm:$0xff]  ;;  %v415_v15 = vld [vmem:[#allocation3 + $0x38] sm:$0xff] }
  0x12   :  { %428 = vmatpush.bf16.msra.mxu2 %v422_v1  ;;  %429 = vmatpush.bf16.msra.mxu3 %v422_v1 }
  0x15   :  { %210 = vmatpush.bf16.msra.mxu0 %v421_v2  ;;  %430 = vmatpush.bf16.msra.mxu1 %v421_v2 }
  0x16   :  { %431 = vmatpush.bf16.msra.mxu2 %v421_v2  ;;  %432 = vmatpush.bf16.msra.mxu3 %v421_v2 }
  0x19   :  { %211 = vmatpush.bf16.msra.mxu0 %v420_v3  ;;  %433 = vmatpush.bf16.msra.mxu1 %v420_v3 }
  0x1a   :  { %434 = vmatpush.bf16.msra.mxu2 %v420_v3  ;;  %435 = vmatpush.bf16.msra.mxu3 %v420_v3 }
  0x1d   :  { %212 = vmatpush.bf16.msra.mxu0 %v419_v4  ;;  %436 = vmatpush.bf16.msra.mxu1 %v419_v4 }
  0x1e   :  { %437 = vmatpush.bf16.msra.mxu2 %v419_v4  ;;  %438 = vmatpush.bf16.msra.mxu3 %v419_v4 }
  0x21   :  { %213 = vmatpush.bf16.msra.mxu0 %v418_v5  ;;  %439 = vmatpush.bf16.msra.mxu1 %v418_v5 }
  0x22   :  { %440 = vmatpush.bf16.msra.mxu2 %v418_v5  ;;  %441 = vmatpush.bf16.msra.mxu3 %v418_v5 }
  0x25   :  { %214 = vmatpush.bf16.msra.mxu0 %v417_v6  ;;  %442 = vmatpush.bf16.msra.mxu1 %v417_v6 }
  0x26   :  { %443 = vmatpush.bf16.msra.mxu2 %v417_v6  ;;  %444 = vmatpush.bf16.msra.mxu3 %v417_v6 }
  0x29   :  { %215 = vmatpush.bf16.msra.mxu0 %v416_v7  ;;  %445 = vmatpush.bf16.msra.mxu1 %v416_v7 }
  0x2a   :  { %446 = vmatpush.bf16.msra.mxu2 %v416_v7  ;;  %447 = vmatpush.bf16.msra.mxu3 %v416_v7 }
  0x2c   :  { %216 = vmatmul.bf16.vlgmr.msra.gmra.mxu0 %v408_v8  ;;  %226 = vmatmul.bf16.vlgmr.msra.gmra.mxu1 %v410_v9 }
  0x2d   :  { %236 = vmatmul.bf16.vlgmr.msra.gmra.mxu2 %v412_v10  ;;  %246 = vmatmul.bf16.vlgmr.msra.gmra.mxu3 %v414_v11 }
  0x3c   :  { %221 = vmatmul.bf16.gmra.mxu0 %v409_v12  ;;  %231 = vmatmul.bf16.gmra.mxu1 %v411_v13 }
  0x3d   :  { %241 = vmatmul.bf16.gmra.mxu2 %v413_v14  ;;  %251 = vmatmul.bf16.gmra.mxu3 %v415_v15 }
  0xa9   :  { %v217_v16 = vpop.f32.mrf.mxu0  ;;  %v227_v17 = vpop.f32.mrf.mxu1 }
  0xaa   :  { %308 = vst [vmem:[#allocation8] sm:$0xff] %v217_v16 }
  0xab   :  { %312 = vst [vmem:[#allocation8 + $0x20] sm:$0xff] %v227_v17 }
  0xb0   :  { %v237_v18 = vpop.f32.mrf.mxu2  ;;  %v247_v19 = vpop.f32.mrf.mxu3 }
  0xb1   :  { %316 = vst [vmem:[#allocation8 + $0x40] sm:$0xff] %v237_v18  ;;  %v219_v20 = vpop.f32.mrf.mxu0  ;;  %v229_v21 = vpop.f32.mrf.mxu1 }
  0xb2   :  { %320 = vst [vmem:[#allocation8 + $0x60] sm:$0xff] %v247_v19 }
  0xb3   :  { %309 = vst [vmem:[#allocation8 + $0x8] sm:$0xff] %v219_v20 }
  0xb4   :  { %313 = vst [vmem:[#allocation8 + $0x28] sm:$0xff] %v229_v21 }
  0xb8   :  { %v239_v22 = vpop.f32.mrf.mxu2  ;;  %v249_v23 = vpop.f32.mrf.mxu3 }
  0xb9   :  { %317 = vst [vmem:[#allocation8 + $0x48] sm:$0xff] %v239_v22  ;;  %v222_v24 = vpop.f32.mrf.mxu0  ;;  %v232_v25 = vpop.f32.mrf.mxu1 }
  0xba   :  { %321 = vst [vmem:[#allocation8 + $0x68] sm:$0xff] %v249_v23 }
  0xbb   :  { %310 = vst [vmem:[#allocation8 + $0x10] sm:$0xff] %v222_v24 }
  0xbc   :  { %314 = vst [vmem:[#allocation8 + $0x30] sm:$0xff] %v232_v25 }
  0xc0   :  { %v242_v26 = vpop.f32.mrf.mxu2  ;;  %v252_v27 = vpop.f32.mrf.mxu3 }
  0xc1   :  { %318 = vst [vmem:[#allocation8 + $0x50] sm:$0xff] %v242_v26  ;;  %v224_v28 = vpop.f32.mrf.mxu0  ;;  %v234_v29 = vpop.f32.mrf.mxu1 }
  0xc2   :  { %322 = vst [vmem:[#allocation8 + $0x70] sm:$0xff] %v252_v27 }
  0xc3   :  { %311 = vst [vmem:[#allocation8 + $0x18] sm:$0xff] %v224_v28 }
  0xc4   :  { %315 = vst [vmem:[#allocation8 + $0x38] sm:$0xff] %v234_v29 }
  0xc8   :  { %v244_v30 = vpop.f32.mrf.mxu2  ;;  %v254_v31 = vpop.f32.mrf.mxu3 }
  0xc9   :  { %319 = vst [vmem:[#allocation8 + $0x58] sm:$0xff] %v244_v30 }
  0xca   :  { %323 = vst [vmem:[#allocation8 + $0x78] sm:$0xff] %v254_v31 }
  0xcb   :  { %336 = dma.vmem_to_hbm [thread:$0]  %s329_s1, 2048, %s331_s23, [#allocation5], %s538_s24, %s538_s24, %s539_s25  }
  0xcc   :  { %531 = dma.done.wait [#allocation5], 2048  }
  0xcd   :  { %532 = vsyncadd [#allocation5], 4294965248 }
  0xce   :  { %341 = vsyncpa [#allocation4], 1 }
  0xcf   :  { %342 = vsyncpa [#allocation7], 1 }
  0xd0   :  { %343 = vsyncpa [#allocation5], 1 }

</bundles_post_ra>
